<compile_context>
chip_gen: v5e
topology: v5e:2x2
jax: 0.10.0
libtpu: 0.0.40
codegen_flags: <defaults>
</compile_context>

<pallas_src>
import jax
import jax.numpy as jnp
from jax.experimental import pallas as pl
from jax.experimental.pallas import tpu as pltpu

K = 3  # kernel_size == stride for MaxPool2d(kernel_size=3), padding=0


def _maxpool_kernel(x_ref, o_ref):
    # x_ref: (K, K, R, lane)  -- window taps on leading axes, dense slab last.
    # o_ref: (R, lane)
    acc = x_ref[0, 0]
    for kh in range(K):
        for kw in range(K):
            if kh == 0 and kw == 0:
                continue
            acc = jnp.maximum(acc, x_ref[kh, kw])   # 8 plain VPU vmax ops
    o_ref[...] = acc


def _ceil_out_dim(size: int, k: int, s: int) -> int:
    # PyTorch ceil_mode: ceil((size - k)/s) + 1, but the last window must start
    # inside the (unpadded, since padding=0) input.
    out = -(-(size - k) // s) + 1
    if (out - 1) * s >= size:
        out -= 1
    return max(out, 1)


def _min_value(dtype):
    dtype = jnp.dtype(dtype)
    if jnp.issubdtype(dtype, jnp.floating):
        return -jnp.inf
    if jnp.issubdtype(dtype, jnp.integer):
        return jnp.iinfo(dtype).min
    if dtype == jnp.bool_:
        return False
    raise NotImplementedError(f"max-pool identity for dtype {dtype}")


def _target_block_bytes() -> int:
    # Bigger input blocks amortize the ~0.35 us per-grid-step overhead.  Cap so
    # the double-buffered footprint (2*(block + block/9)) stays comfortably
    # inside the default scoped-VMEM limit on every generation, so we never
    # have to touch vmem_limit_bytes:
    #   v6e/v7x (32 MiB scoped): 4 MiB blocks -> ~9 MiB resident.
    #   v5e     (16 MiB scoped): 1.5 MiB blocks -> ~3.4 MiB resident.
    try:
        kind = jax.devices()[0].device_kind.lower()
    except Exception:
        kind = ""
    if ("v6" in kind) or ("v7" in kind) or ("7x" in kind):
        return 4 << 20
    return 3 << 19  # 1.5 MiB (conservative default; right for v5e)


def _pick_rows_per_block(rows: int, lane: int, itemsize: int, target: int) -> int:
    # R a multiple of 8 so the sublane dim tiles cleanly; keep >= ~4 grid steps
    # when there is enough work so v7x megacore can shard across both TCs.
    r = target // max(1, K * K * lane * itemsize)
    r = max(8, (r // 8) * 8)
    if rows >= 32:
        r = min(r, max(8, (rows // 32) * 8))
    return rows if r >= rows else r


@jax.jit
def maxpool2d_ceil(x_nchw: jax.Array) -> jax.Array:
    """MaxPool2d(kernel_size=3, stride=3, padding=0, ceil_mode=True) on NCHW."""
    N, C, H, W = x_nchw.shape
    Ho = _ceil_out_dim(H, K, K)
    Wo = _ceil_out_dim(W, K, K)
    Hp, Wp = Ho * K, Wo * K

    x = x_nchw
    if Hp != H or Wp != W:
        # ceil-mode ragged tail: pad with the dtype's max-identity.  Inside jit
        # this pad fuses with the single layout transpose below.
        x = jnp.pad(
            x,
            ((0, 0), (0, 0), (0, Hp - H), (0, Wp - W)),
            constant_values=_min_value(x.dtype),
        )

    # Expose the 3x3 taps as two leading axes with a SINGLE transpose taken
    # directly off the NCHW view.  Two foldings, picked per shape:
    #   * "CW": (K, K, N*C*Ho, Wo)  -> output reshapes to NCHW for free.
    #   * "WC": (K, K, N*Ho, Wo*C)  -> denser lane axis when Wo is small.
    x = x.reshape(N, C, Ho, K, Wo, K)
    use_cw = (Wo >= 128) or (C == 1)
    if use_cw:
        x = jnp.transpose(x, (3, 5, 0, 1, 2, 4)).reshape(K, K, N * C * Ho, Wo)
        rows, lane = N * C * Ho, Wo
    else:
        x = jnp.transpose(x, (3, 5, 0, 2, 4, 1)).reshape(K, K, N * Ho, Wo * C)
        rows, lane = N * Ho, Wo * C

    R = _pick_rows_per_block(rows, lane, jnp.dtype(x.dtype).itemsize,
                             _target_block_bytes())
    grid = (pl.cdiv(rows, R),)

    out = pl.pallas_call(
        _maxpool_kernel,
        out_shape=jax.ShapeDtypeStruct((rows, lane), x.dtype),
        grid_spec=pltpu.PrefetchScalarGridSpec(
            num_scalar_prefetch=0,
            grid=grid,
            in_specs=[pl.BlockSpec((K, K, R, lane), lambda r: (0, 0, r, 0))],
            out_specs=pl.BlockSpec((R, lane), lambda r: (r, 0)),
        ),
        compiler_params=pltpu.CompilerParams(
            dimension_semantics=("parallel",),
        ),
    )(x)

    if use_cw:
        return out.reshape(N, C, Ho, Wo)            # already NCHW, no transpose
    out = out.reshape(N, Ho, Wo, C)
    return jnp.transpose(out, (0, 3, 1, 2))         # small (|out|) back-transpose


def _reference(x_nchw: jax.Array) -> jax.Array:
    """Pure-JAX reference (lax.reduce_window with dtype-aware identity padding)."""
    N, C, H, W = x_nchw.shape
    Ho = _ceil_out_dim(H, K, K)
    Wo = _ceil_out_dim(W, K, K)
    pad_h, pad_w = Ho * K - H, Wo * K - W
    init = jnp.array(_min_value(x_nchw.dtype), x_nchw.dtype)
    return jax.lax.reduce_window(
        x_nchw,
        init,
        jax.lax.max,
        window_dimensions=(1, 1, K, K),
        window_strides=(1, 1, K, K),
        padding=((0, 0), (0, 0), (0, pad_h), (0, pad_w)),
    )


if __name__ == "__main__":
    key = jax.random.PRNGKey(0)

    # Main case (exercises the ceil-mode tail and the Wo*C "WC" folding).
    x = jax.random.normal(key, (2, 4, 16, 16), dtype=jnp.float32)
    y = jax.block_until_ready(maxpool2d_ceil(x))
    y_ref = _reference(x)
    assert y.shape == (2, 4, 6, 6), y.shape
    assert jnp.allclose(y, y_ref), "Pallas maxpool mismatch vs reference (WC path)"

    # Small C==1 case (exercises the transpose-free-output "CW" folding).
    x2 = jax.random.normal(jax.random.PRNGKey(1), (1, 1, 10, 9), dtype=jnp.float32)
    y2 = jax.block_until_ready(maxpool2d_ceil(x2))
    assert jnp.allclose(y2, _reference(x2)), "Pallas maxpool mismatch vs reference (CW path)"

    print("KERNEL_OK")
</pallas_src>

<mosaic_0001>
module attributes {stable_mosaic.version = 11 : i64} {
  func.func @_maxpool_kernel(%arg0: i32, %arg1: memref<3x3x12x24xf32, #tpu.memory_space<vmem>>, %arg2: memref<12x24xf32, #tpu.memory_space<vmem>>) attributes {dimension_semantics = [#tpu.dimension_semantics<parallel>], iteration_bounds = array<i64: 1>, scalar_prefetch = 0 : i64, scratch_operands = 0 : i64, tpu.core_type = #tpu.core_type<tc>, window_params = [{transform_indices = @transform_0, window_bounds = array<i64: 3, 3, 12, 24>}, {transform_indices = @transform_1, window_bounds = array<i64: 12, 24>}]} {
    %c0 = arith.constant 0 : index
    %c0_0 = arith.constant 0 : index
    %c0_1 = arith.constant 0 : index
    %c0_2 = arith.constant 0 : index
    %0 = vector.load %arg1[%c0, %c0_0, %c0_1, %c0_2] : memref<3x3x12x24xf32, #tpu.memory_space<vmem>>, vector<1x1x12x24xf32>
    %1 = vector.shape_cast %0 : vector<1x1x12x24xf32> to vector<12x24xf32>
    %c0_3 = arith.constant 0 : index
    %c1 = arith.constant 1 : index
    %c0_4 = arith.constant 0 : index
    %c0_5 = arith.constant 0 : index
    %2 = vector.load %arg1[%c0_3, %c1, %c0_4, %c0_5] : memref<3x3x12x24xf32, #tpu.memory_space<vmem>>, vector<1x1x12x24xf32>
    %3 = vector.shape_cast %2 : vector<1x1x12x24xf32> to vector<12x24xf32>
    %4 = arith.maximumf %1, %3 : vector<12x24xf32>
    %c0_6 = arith.constant 0 : index
    %c2 = arith.constant 2 : index
    %c0_7 = arith.constant 0 : index
    %c0_8 = arith.constant 0 : index
    %5 = vector.load %arg1[%c0_6, %c2, %c0_7, %c0_8] : memref<3x3x12x24xf32, #tpu.memory_space<vmem>>, vector<1x1x12x24xf32>
    %6 = vector.shape_cast %5 : vector<1x1x12x24xf32> to vector<12x24xf32>
    %7 = arith.maximumf %4, %6 : vector<12x24xf32>
    %c1_9 = arith.constant 1 : index
    %c0_10 = arith.constant 0 : index
    %c0_11 = arith.constant 0 : index
    %c0_12 = arith.constant 0 : index
    %8 = vector.load %arg1[%c1_9, %c0_10, %c0_11, %c0_12] : memref<3x3x12x24xf32, #tpu.memory_space<vmem>>, vector<1x1x12x24xf32>
    %9 = vector.shape_cast %8 : vector<1x1x12x24xf32> to vector<12x24xf32>
    %10 = arith.maximumf %7, %9 : vector<12x24xf32>
    %c1_13 = arith.constant 1 : index
    %c1_14 = arith.constant 1 : index
    %c0_15 = arith.constant 0 : index
    %c0_16 = arith.constant 0 : index
    %11 = vector.load %arg1[%c1_13, %c1_14, %c0_15, %c0_16] : memref<3x3x12x24xf32, #tpu.memory_space<vmem>>, vector<1x1x12x24xf32>
    %12 = vector.shape_cast %11 : vector<1x1x12x24xf32> to vector<12x24xf32>
    %13 = arith.maximumf %10, %12 : vector<12x24xf32>
    %c1_17 = arith.constant 1 : index
    %c2_18 = arith.constant 2 : index
    %c0_19 = arith.constant 0 : index
    %c0_20 = arith.constant 0 : index
    %14 = vector.load %arg1[%c1_17, %c2_18, %c0_19, %c0_20] : memref<3x3x12x24xf32, #tpu.memory_space<vmem>>, vector<1x1x12x24xf32>
    %15 = vector.shape_cast %14 : vector<1x1x12x24xf32> to vector<12x24xf32>
    %16 = arith.maximumf %13, %15 : vector<12x24xf32>
    %c2_21 = arith.constant 2 : index
    %c0_22 = arith.constant 0 : index
    %c0_23 = arith.constant 0 : index
    %c0_24 = arith.constant 0 : index
    %17 = vector.load %arg1[%c2_21, %c0_22, %c0_23, %c0_24] : memref<3x3x12x24xf32, #tpu.memory_space<vmem>>, vector<1x1x12x24xf32>
    %18 = vector.shape_cast %17 : vector<1x1x12x24xf32> to vector<12x24xf32>
    %19 = arith.maximumf %16, %18 : vector<12x24xf32>
    %c2_25 = arith.constant 2 : index
    %c1_26 = arith.constant 1 : index
    %c0_27 = arith.constant 0 : index
    %c0_28 = arith.constant 0 : index
    %20 = vector.load %arg1[%c2_25, %c1_26, %c0_27, %c0_28] : memref<3x3x12x24xf32, #tpu.memory_space<vmem>>, vector<1x1x12x24xf32>
    %21 = vector.shape_cast %20 : vector<1x1x12x24xf32> to vector<12x24xf32>
    %22 = arith.maximumf %19, %21 : vector<12x24xf32>
    %c2_29 = arith.constant 2 : index
    %c2_30 = arith.constant 2 : index
    %c0_31 = arith.constant 0 : index
    %c0_32 = arith.constant 0 : index
    %23 = vector.load %arg1[%c2_29, %c2_30, %c0_31, %c0_32] : memref<3x3x12x24xf32, #tpu.memory_space<vmem>>, vector<1x1x12x24xf32>
    %24 = vector.shape_cast %23 : vector<1x1x12x24xf32> to vector<12x24xf32>
    %25 = arith.maximumf %22, %24 : vector<12x24xf32>
    %c0_33 = arith.constant 0 : index
    %c0_34 = arith.constant 0 : index
    %26 = vector.load %arg2[%c0_33, %c0_34] : memref<12x24xf32, #tpu.memory_space<vmem>>, vector<12x24xf32>
    tpu.vector_store %arg2[%c0_33, %c0_34], %25 {strides = array<i32>} : memref<12x24xf32, #tpu.memory_space<vmem>>, vector<12x24xf32>,
    return
  }
  func.func @transform_0(%arg0: i32) -> (i32, i32, i32, i32) {
    %c0_i32 = arith.constant 0 : i32
    %c0_i32_0 = arith.constant 0 : i32
    %c0_i32_1 = arith.constant 0 : i32
    %c0_i32_2 = arith.constant 0 : i32
    return %c0_i32, %c0_i32_0, %arg0, %c0_i32_1 : i32, i32, i32, i32
  }
  func.func @transform_1(%arg0: i32) -> (i32, i32) {
    %c0_i32 = arith.constant 0 : i32
    %c0_i32_0 = arith.constant 0 : i32
    return %arg0, %c0_i32 : i32, i32
  }
}

</mosaic_0001>

<bundles_post_ra>
// kernel: maxpool2d_ceil.1
= control target key start
LH: loop header
LB: loop body
LE: loop exit
PB: predicated region body
PF: predicated region fallthrough
CT: control target
= control target key end

     0   :  { %vm50_vm0 = vcmask 195584   ;;  %vm52_vm1 = vcmask 191488   ;;  %s144_s0 = inlined_call_operand.vmem [shape: f32[3,3,12,24], index: 0, kind: input, shape index: {}]   ;;  %s145_s1 = inlined_call_operand.vmem [shape: f32[12,24], index: 1, kind: output, shape index: {}]  }
   0x1   :  { %v8_v0 = vld [vmem:[%s144_s0] sm:$0xff]  ;;  %v58_v1 = vld [vmem:[%s144_s0 + $0x10] sm:$0xff]  ;;  %v9_v6 = vld [vmem:[%s144_s0 + $0x8] sm:$0xf] }
   0x2   :  { %v60_v2 = vld [vmem:[%s144_s0 + $0x20] sm:$0xff]  ;;  %v13_v3 = vmax.f32 %v8_v0, %v58_v1  ;;  %v62_v4 = vld [vmem:[%s144_s0 + $0x30] sm:$0xff]  ;;  %v59_v7 = vld [vmem:[%s144_s0 + $0x18] sm:$0xf] }
   0x3   :  { %v61_v8 = vld [vmem:[%s144_s0 + $0x28] sm:$0xf]  ;;  %v64_v9 = vld [vmem:[%s144_s0 + $0x40] sm:$0xff]  ;;  %v14_v10 = vmax.f32 %v9_v6, %v59_v7  ;;  %v63_v12 = vld [vmem:[%s144_s0 + $0x38] sm:$0xf] }
   0x4   :  { %v18_v5 = vmax.f32 %v13_v3, %v60_v2  ;;  %v66_v13 = vld [vmem:[%s144_s0 + $0x50] sm:$0xff]  ;;  %v65_v16 = vld [vmem:[%s144_s0 + $0x48] sm:$0xf]  ;;  %v68_v17 = vld [vmem:[%s144_s0 + $0x60] sm:$0xff] }
   0x5   :  { %v19_v14 = vmax.f32 %v14_v10, %v61_v8  ;;  %v67_v20 = vld [vmem:[%s144_s0 + $0x58] sm:$0xf]  ;;  %v70_v21 = vld [vmem:[%s144_s0 + $0x70] sm:$0xff]  ;;  %v69_v24 = vld [vmem:[%s144_s0 + $0x68] sm:$0xf] }
   0x6   :  { %v23_v11 = vmax.f32 %v18_v5, %v62_v4  ;;  %v72_v25 = vld [vmem:[%s144_s0 + $0x80] sm:$0xff]  ;;  %v71_v28 = vld [vmem:[%s144_s0 + $0x78] sm:$0xf]  ;;  %v73_v31 = vld [vmem:[%s144_s0 + $0x88] sm:$0xf] }
   0x7   :  { %v24_v18 = vmax.f32 %v19_v14, %v63_v12 }
   0x8   :  { %v28_v15 = vmax.f32 %v23_v11, %v64_v9 }
   0x9   :  { %v29_v22 = vmax.f32 %v24_v18, %v65_v16 }
   0xa   :  { %v33_v19 = vmax.f32 %v28_v15, %v66_v13 }
   0xb   :  { %v34_v26 = vmax.f32 %v29_v22, %v67_v20 }
   0xc   :  { %v38_v23 = vmax.f32 %v33_v19, %v68_v17 }
   0xd   :  { %v39_v29 = vmax.f32 %v34_v26, %v69_v24 }
   0xe   :  { %v43_v27 = vmax.f32 %v38_v23, %v70_v21 }
   0xf   :  { %v44_v32 = vmax.f32 %v39_v29, %v71_v28 }
  0x10   :  { %v48_v30 = vmax.f32 %v43_v27, %v72_v25 }
  0x11   :  { %v49_v33 = vmax.f32 %v44_v32, %v73_v31 }
  0x12   :  { %51 = vst.msk [vmem:[%s145_s1] sm:$0xff] %vm50_vm0, %v48_v30 }
  0x13   :  { %53 = vst.msk [vmem:[%s145_s1 + $0x8] sm:$0xf] %vm52_vm1, %v49_v33 }

</bundles_post_ra>
